<compile_context>
chip_gen: v7x
topology: tpu7x:2x2x1
jax: 0.10.0
libtpu: 0.0.40
codegen_flags: <defaults>
</compile_context>

<pallas_src>
import jax
import jax.numpy as jnp
from jax import lax
from jax.experimental import pallas as pl
from jax.experimental.pallas import tpu as pltpu


def _cdiv(a, b):
    return -(-a // b)


def _round_up(x, m):
    return ((x + m - 1) // m) * m


def _vmem_limit_bytes():
    """~60% of physical VMEM (v7x: ~38 MiB of 64; v5e/v6e: ~77 MiB of 128)."""
    cap = 64 * 1024 * 1024
    try:
        cap = int(pltpu.get_tpu_info().vmem_capacity_bytes)
    except Exception:
        pass
    return max(16 * 1024 * 1024, min(int(cap * 0.6), 96 * 1024 * 1024))


def _make_kernel(*, p, eps, has_residual, prenorm):
    """Build a kernel variant for (p>0, has_residual, prenorm) — all static."""

    def kernel(*refs):
        idx = 0
        seed_ref = None
        if p > 0.0:
            seed_ref = refs[idx]; idx += 1
        x0_ref = refs[idx]; idx += 1
        res_ref = None
        if has_residual:
            res_ref = refs[idx]; idx += 1
        gamma_ref = refs[idx]; idx += 1
        beta_ref = refs[idx]; idx += 1
        z_ref = refs[idx]; idx += 1
        x_ref = None
        if prenorm:
            x_ref = refs[idx]; idx += 1

        x = x0_ref[...].astype(jnp.float32)

        if p > 0.0:
            # Counter-based hash (2 mixing rounds), keep-test as one full-width
            # uint32 compare.  Statistically weaker than Philox / the HW PRNG
            # but adequate for dropout and portable to interpret mode.
            rt, hd = x.shape
            row0 = pl.program_id(0) * rt
            seed_u32 = seed_ref[0].astype(jnp.uint32) * jnp.uint32(0x85EBCA77)
            r = (lax.broadcasted_iota(jnp.int32, (rt, hd), 0) + row0).astype(jnp.uint32)
            c = lax.broadcasted_iota(jnp.int32, (rt, hd), 1).astype(jnp.uint32)
            h = (r + seed_u32) * jnp.uint32(0x9E3779B1) + c
            h = (h ^ (h >> jnp.uint32(16))) * jnp.uint32(0x7FEB352D)
            h = (h ^ (h >> jnp.uint32(15))) * jnp.uint32(0x846CA68B)
            thresh = min(int(round(p * (1 << 32))), (1 << 32) - 1)
            keep = h >= jnp.uint32(thresh)
            x = jnp.where(keep, x * (1.0 / (1.0 - p)), 0.0)

        if has_residual:
            x = x + res_ref[...].astype(jnp.float32)

        # Two-pass mean / variance (better numerics than E[x^2] - mu^2; this
        # kernel is HBM-bound so the extra VPU pass is free filler).
        inv_n = 1.0 / x.shape[-1]
        mu = jnp.sum(x, axis=-1, keepdims=True) * inv_n
        xc = x - mu
        var = jnp.sum(xc * xc, axis=-1, keepdims=True) * inv_n
        rsigma = lax.rsqrt(var + eps)

        z = xc * rsigma * gamma_ref[...].astype(jnp.float32) \
            + beta_ref[...].astype(jnp.float32)

        z_ref[...] = z.astype(z_ref.dtype)
        if prenorm:
            x_ref[...] = x.astype(x_ref.dtype)

    return kernel


def dropout_add_layer_norm(x0, residual, gamma, beta, *, p=0.0, eps=1e-5,
                           prenorm=False, residual_in_fp32=False, seed=0,
                           row_tile=None):
    """JAX/Pallas equivalent of flash-attn's dropout_add_layer_norm forward."""
    hidden = gamma.shape[-1]
    orig_shape = x0.shape
    x0m = x0.reshape(-1, hidden)
    rows = x0m.shape[0]
    has_residual = residual is not None
    resm = residual.reshape(-1, hidden) if has_residual else None

    z_dtype = x0.dtype
    if has_residual:
        x_dtype = resm.dtype
    else:
        x_dtype = jnp.float32 if residual_in_fp32 else x0.dtype

    itemsize = jnp.dtype(x0.dtype).itemsize
    # dtype-aware sublane packing: 8 rows for 4B, 16 for 2B, 32 for 1B dtypes.
    packing = {4: 8, 2: 16, 1: 32}.get(itemsize, 8)

    vmem_limit = _vmem_limit_bytes()

    if row_tile is None:
        # Per-row VMEM cost: each pipelined stream is double-buffered, plus
        # full-tile fp32 temporaries live in the body (and mask temps if p>0).
        per_row = 2 * hidden * itemsize
        if has_residual:
            per_row += 2 * hidden * jnp.dtype(resm.dtype).itemsize
        per_row += 2 * hidden * jnp.dtype(z_dtype).itemsize
        if prenorm:
            per_row += 2 * hidden * jnp.dtype(x_dtype).itemsize
        per_row += 4 * hidden * 4
        if p > 0.0:
            per_row += 3 * hidden * 4          # u32 hash / bool / scaled-x temps
        budget = vmem_limit // 2               # headroom
        fit = (budget // per_row) // packing * packing
        row_tile = max(packing, min(1024, fit))
        # keep >= ~8 grid steps when the problem is big enough so input
        # prefetch / output writeback overlap compute (and both v7x TCs get
        # >= 4 steps each); negligible per-step overhead on 1-TC chips.
        target_steps = 8
        if rows >= target_steps * packing:
            row_tile = min(row_tile, _round_up(_cdiv(rows, target_steps), packing))
        row_tile = min(row_tile, _round_up(rows, packing))
    row_tile = max(packing, _round_up(int(row_tile), packing))

    grid_n = _cdiv(rows, row_tile)   # ragged last block handled by Pallas masking

    gamma2 = gamma.reshape(1, hidden)
    beta2 = beta.reshape(1, hidden)

    kernel = _make_kernel(p=float(p), eps=float(eps),
                          has_residual=has_residual, prenorm=prenorm)

    row_spec = pl.BlockSpec((row_tile, hidden), lambda i: (i, 0))
    param_spec = pl.BlockSpec((1, hidden), lambda i: (0, 0))

    in_specs, args = [], []
    if p > 0.0:
        in_specs.append(pl.BlockSpec(memory_space=pltpu.MemorySpace.SMEM))
        args.append(jnp.asarray([seed], dtype=jnp.int32))
    in_specs.append(row_spec); args.append(x0m)
    if has_residual:
        in_specs.append(row_spec); args.append(resm)
    in_specs += [param_spec, param_spec]
    args += [gamma2, beta2]

    if prenorm:
        out_shape = (jax.ShapeDtypeStruct((rows, hidden), z_dtype),
                     jax.ShapeDtypeStruct((rows, hidden), x_dtype))
        out_specs = (row_spec, row_spec)
    else:
        out_shape = jax.ShapeDtypeStruct((rows, hidden), z_dtype)
        out_specs = row_spec

    # Advisory cost model: purely memory-bound fused elementwise + row reduce.
    bytes_accessed = x0m.size * itemsize
    if has_residual:
        bytes_accessed += resm.size * jnp.dtype(resm.dtype).itemsize
    bytes_accessed += rows * hidden * jnp.dtype(z_dtype).itemsize
    if prenorm:
        bytes_accessed += rows * hidden * jnp.dtype(x_dtype).itemsize
    bytes_accessed += 2 * hidden * 4
    cost = pl.CostEstimate(flops=10 * rows * hidden,
                           transcendentals=rows,
                           bytes_accessed=int(bytes_accessed))

    out = pl.pallas_call(
        kernel,
        out_shape=out_shape,
        grid=(grid_n,),
        in_specs=in_specs,
        out_specs=out_specs,
        cost_estimate=cost,
        compiler_params=pltpu.CompilerParams(
            dimension_semantics=("parallel",),
            vmem_limit_bytes=vmem_limit),
    )(*args)

    if prenorm:
        zm, xm = out
        return zm.reshape(orig_shape), xm.reshape(orig_shape)
    return out.reshape(orig_shape)


class DropoutAddLayerNormJAX:
    """Mirror of the torch DropoutAddLayerNorm module (forward only)."""

    def __init__(self, hidden_size, prenorm=False, p=0.0, eps=1e-5,
                 residual_in_fp32=False, dtype=jnp.float32):
        self.prenorm = prenorm
        self.p = p
        self.eps = eps
        self.residual_in_fp32 = residual_in_fp32
        # reset_parameters(): weight = ones, bias = zeros (deterministic init)
        self.weight = jnp.ones((hidden_size,), dtype=dtype)
        self.bias = jnp.zeros((hidden_size,), dtype=dtype)
        self.training = True

    def __call__(self, x0, residual=None, seed=0):
        p = self.p if self.training else 0.0
        return dropout_add_layer_norm(
            x0, residual, self.weight, self.bias, p=p, eps=self.eps,
            prenorm=self.prenorm, residual_in_fp32=self.residual_in_fp32,
            seed=seed)


def _reference(x0, residual, gamma, beta, eps):
    # pure-JAX reference (p = 0 case)
    x = x0.astype(jnp.float32)
    if residual is not None:
        x = x + residual.astype(jnp.float32)
    mu = jnp.mean(x, axis=-1, keepdims=True)
    var = jnp.mean((x - mu) ** 2, axis=-1, keepdims=True)
    return (x - mu) * lax.rsqrt(var + eps) * gamma + beta


if __name__ == "__main__":
    batch, seq, hidden = 2, 8, 32
    key = jax.random.PRNGKey(0)
    k0, k1 = jax.random.split(key)
    x0 = jax.random.normal(k0, (batch, seq, hidden), dtype=jnp.float32)
    residual = jax.random.normal(k1, (batch, seq, hidden), dtype=jnp.float32)

    # 1) prenorm=True, p=0, with residual -> deterministic, check vs. reference.
    mod = DropoutAddLayerNormJAX(hidden_size=hidden, prenorm=True, p=0.0, eps=1e-5)
    z, x_pre = mod(x0, residual)
    jax.block_until_ready((z, x_pre))
    z_ref = _reference(x0, residual, mod.weight, mod.bias, mod.eps)
    assert jnp.allclose(z, z_ref, atol=1e-4, rtol=1e-4)
    assert jnp.allclose(x_pre, x0 + residual, atol=1e-5, rtol=1e-5)

    # 2) residual=None path (kernel variant without the residual HBM stream).
    mod2 = DropoutAddLayerNormJAX(hidden_size=hidden, prenorm=False, p=0.0, eps=1e-5)
    z2 = mod2(x0, None)
    jax.block_until_ready(z2)
    z2_ref = _reference(x0, None, mod2.weight, mod2.bias, mod2.eps)
    assert jnp.allclose(z2, z2_ref, atol=1e-4, rtol=1e-4)

    # 3) dropout path (p > 0): exercise the hash-mask branch.
    mod3 = DropoutAddLayerNormJAX(hidden_size=hidden, prenorm=False, p=0.1, eps=1e-5)
    z3 = mod3(x0, residual, seed=123)
    jax.block_until_ready(z3)
    assert bool(jnp.all(jnp.isfinite(z3)))

    # 4) forced multi-step grid (row_tile=8 -> grid_n=2) to exercise tiling.
    z4 = dropout_add_layer_norm(x0, residual, mod.weight, mod.bias, p=0.0,
                                eps=1e-5, prenorm=False, row_tile=8)
    jax.block_until_ready(z4)
    assert jnp.allclose(z4, z_ref, atol=1e-4, rtol=1e-4)

    print("KERNEL_OK")
</pallas_src>

<mosaic_0001>
module attributes {stable_mosaic.version = 11 : i64} {
  func.func @kernel(%arg0: i32, %arg1: memref<16x32xf32, #tpu.memory_space<vmem>>, %arg2: memref<16x32xf32, #tpu.memory_space<vmem>>, %arg3: memref<1x32xf32, #tpu.memory_space<vmem>>, %arg4: memref<1x32xf32, #tpu.memory_space<vmem>>, %arg5: memref<16x32xf32, #tpu.memory_space<vmem>>, %arg6: memref<16x32xf32, #tpu.memory_space<vmem>>) attributes {dimension_semantics = [#tpu.dimension_semantics<parallel>], iteration_bounds = array<i64: 1>, scalar_prefetch = 0 : i64, scratch_operands = 0 : i64, tpu.core_type = #tpu.core_type<tc>, window_params = [{transform_indices = @transform_0, window_bounds = array<i64: 16, 32>}, {transform_indices = @transform_1, window_bounds = array<i64: 16, 32>}, {pipeline_mode = #tpu.pipeline_mode<synchronous>, transform_indices = @transform_2, window_bounds = array<i64: 1, 32>}, {pipeline_mode = #tpu.pipeline_mode<synchronous>, transform_indices = @transform_3, window_bounds = array<i64: 1, 32>}, {transform_indices = @transform_4, window_bounds = array<i64: 16, 32>}, {transform_indices = @transform_5, window_bounds = array<i64: 16, 32>}]} {
    %c0 = arith.constant 0 : index
    %c0_0 = arith.constant 0 : index
    %0 = vector.load %arg1[%c0, %c0_0] : memref<16x32xf32, #tpu.memory_space<vmem>>, vector<16x32xf32>
    %c0_1 = arith.constant 0 : index
    %c0_2 = arith.constant 0 : index
    %1 = vector.load %arg2[%c0_1, %c0_2] : memref<16x32xf32, #tpu.memory_space<vmem>>, vector<16x32xf32>
    %2 = arith.addf %0, %1 : vector<16x32xf32>
    %cst = arith.constant dense<0.000000e+00> : vector<16xf32>
    %3 = vector.multi_reduction <add>, %2, %cst [1] : vector<16x32xf32> to vector<16xf32>
    %4 = vector.shape_cast %3 : vector<16xf32> to vector<16x1xf32>
    %cst_3 = arith.constant 3.125000e-02 : f32
    %5 = vector.broadcast %cst_3 : f32 to vector<16x1xf32>
    %6 = arith.mulf %4, %5 : vector<16x1xf32>
    %7 = vector.broadcast %6 : vector<16x1xf32> to vector<16x32xf32>
    %8 = arith.subf %2, %7 : vector<16x32xf32>
    %9 = arith.mulf %8, %8 : vector<16x32xf32>
    %cst_4 = arith.constant dense<0.000000e+00> : vector<16xf32>
    %10 = vector.multi_reduction <add>, %9, %cst_4 [1] : vector<16x32xf32> to vector<16xf32>
    %11 = vector.shape_cast %10 : vector<16xf32> to vector<16x1xf32>
    %cst_5 = arith.constant 3.125000e-02 : f32
    %12 = vector.broadcast %cst_5 : f32 to vector<16x1xf32>
    %13 = arith.mulf %11, %12 : vector<16x1xf32>
    %cst_6 = arith.constant 9.99999974E-6 : f32
    %14 = vector.broadcast %cst_6 : f32 to vector<16x1xf32>
    %15 = arith.addf %13, %14 : vector<16x1xf32>
    %16 = math.rsqrt %15 : vector<16x1xf32>
    %17 = vector.broadcast %16 : vector<16x1xf32> to vector<16x32xf32>
    %18 = arith.mulf %8, %17 : vector<16x32xf32>
    %c0_7 = arith.constant 0 : index
    %c0_8 = arith.constant 0 : index
    %19 = vector.load %arg3[%c0_7, %c0_8] : memref<1x32xf32, #tpu.memory_space<vmem>>, vector<1x32xf32>
    %20 = vector.broadcast %19 : vector<1x32xf32> to vector<16x32xf32>
    %21 = arith.mulf %18, %20 : vector<16x32xf32>
    %c0_9 = arith.constant 0 : index
    %c0_10 = arith.constant 0 : index
    %22 = vector.load %arg4[%c0_9, %c0_10] : memref<1x32xf32, #tpu.memory_space<vmem>>, vector<1x32xf32>
    %23 = vector.broadcast %22 : vector<1x32xf32> to vector<16x32xf32>
    %24 = arith.addf %21, %23 : vector<16x32xf32>
    %c0_11 = arith.constant 0 : index
    %c0_12 = arith.constant 0 : index
    %25 = vector.load %arg5[%c0_11, %c0_12] : memref<16x32xf32, #tpu.memory_space<vmem>>, vector<16x32xf32>
    tpu.vector_store %arg5[%c0_11, %c0_12], %24 {strides = array<i32>} : memref<16x32xf32, #tpu.memory_space<vmem>>, vector<16x32xf32>,
    %c0_13 = arith.constant 0 : index
    %c0_14 = arith.constant 0 : index
    %26 = vector.load %arg6[%c0_13, %c0_14] : memref<16x32xf32, #tpu.memory_space<vmem>>, vector<16x32xf32>
    tpu.vector_store %arg6[%c0_13, %c0_14], %2 {strides = array<i32>} : memref<16x32xf32, #tpu.memory_space<vmem>>, vector<16x32xf32>,
    return
  }
  func.func @transform_0(%arg0: i32) -> (i32, i32) {
    %c0_i32 = arith.constant 0 : i32
    %c0_i32_0 = arith.constant 0 : i32
    return %arg0, %c0_i32 : i32, i32
  }
  func.func @transform_1(%arg0: i32) -> (i32, i32) {
    %c0_i32 = arith.constant 0 : i32
    %c0_i32_0 = arith.constant 0 : i32
    return %arg0, %c0_i32 : i32, i32
  }
  func.func @transform_2(%arg0: i32) -> (i32, i32) {
    %c0_i32 = arith.constant 0 : i32
    %c0_i32_0 = arith.constant 0 : i32
    %c0_i32_1 = arith.constant 0 : i32
    return %c0_i32, %c0_i32_0 : i32, i32
  }
  func.func @transform_3(%arg0: i32) -> (i32, i32) {
    %c0_i32 = arith.constant 0 : i32
    %c0_i32_0 = arith.constant 0 : i32
    %c0_i32_1 = arith.constant 0 : i32
    return %c0_i32, %c0_i32_0 : i32, i32
  }
  func.func @transform_4(%arg0: i32) -> (i32, i32) {
    %c0_i32 = arith.constant 0 : i32
    %c0_i32_0 = arith.constant 0 : i32
    return %arg0, %c0_i32 : i32, i32
  }
  func.func @transform_5(%arg0: i32) -> (i32, i32) {
    %c0_i32 = arith.constant 0 : i32
    %c0_i32_0 = arith.constant 0 : i32
    return %arg0, %c0_i32 : i32, i32
  }
}

</mosaic_0001>

<bundles_post_ra>
// kernel: tpu_custom_call.1
= control target key start
LH: loop header
LB: loop body
LE: loop exit
PB: predicated region body
PF: predicated region fallthrough
CT: control target
= control target key end

     0   :  { %11 = vsyncpa [#allocation3], 0  ;;  %s356_s0 = inlined_call_operand.hbm [shape: f32[16,32], index: 0, kind: input, shape index: {}]   ;;  %s357_s1 = inlined_call_operand.hbm [shape: f32[16,32], index: 1, kind: input, shape index: {}]   ;;  %s358_s2 = inlined_call_operand.vmem [shape: f32[1,32], index: 2, kind: input, shape index: {}]   ;;  %s359_s3 = inlined_call_operand.vmem [shape: f32[1,32], index: 3, kind: input, shape index: {}]   ;;  %s360_s4 = inlined_call_operand.hbm [shape: f32[16,32], index: 4, kind: output, shape index: {0}]   ;;  %s361_s5 = inlined_call_operand.hbm [shape: f32[16,32], index: 5, kind: output, shape index: {1}]  }
   0x1   :  { %12 = vsyncpa [#allocation6], 0 }
   0x2   :  { %13 = vsyncpa [#allocation4], 0 }
   0x3   :  { %14 = vsyncpa [#allocation9], 0  ;;  %s246_s18 = smov [#allocation2]   ;;  %s150_s22 = scalar_lea.hbm %s356_s0, 256 }
   0x4   :  { %s20_s19 = sshll.u32 %s246_s18, 4  ;;  %p151_p0 = scmp.ne.s32.totalorder %s356_s0, %s150_s22  ;;  %s21_s19 = int_to_ptr.vmem [resolvable:$true] %s20_s19 }
   0x5   :  { %p154_p1 = scmp.lt.u32.totalorder %s150_s22, %s356_s0 }
   0x7   :  { %p156_p2 = pnand %p154_p1, %p151_p0 }
   0x9   :  { %159 = shalt.err (!%p156_p2)
}
   0xa   :  { %s160_s27 = scalar_lea.vmem %s21_s19, 256  ;;  %p165_p4 = scmp.lt.s32.totalorder %s21_s19, %s21_s19 }
   0xb   :  { %p161_p3 = scmp.ne.s32.totalorder %s21_s19, %s160_s27  ;;  %p166_p5 = scmp.lt.s32.totalorder %s160_s27, %s160_s27 }
   0xd   :  { %p167_p6 = por %p166_p5, %p165_p4 }
   0xf   :  { %p168_p7 = pnand %p167_p6, %p161_p3 }
  0x11   :  { %171 = shalt.err (!%p168_p7)
}
  0x12   :  { %s247_s28 = smov 128   ;;  %s248_s29 = smov 8  }
  0x13   :  { %26 = dma.hbm_to_vmem [thread:$0]  %s356_s0, 256, %s21_s19, [#allocation3], %s247_s28, %s247_s28, %s248_s29  }
  0x14   :  { %s249_s7 = smov [#allocation5]   ;;  %s172_s11 = scalar_lea.hbm %s357_s1, 256 }
  0x15   :  { %s32_s8 = sshll.u32 %s249_s7, 4  ;;  %p173_p8 = scmp.ne.s32.totalorder %s357_s1, %s172_s11  ;;  %s33_s8 = int_to_ptr.vmem [resolvable:$true] %s32_s8 }
  0x16   :  { %p176_p9 = scmp.lt.u32.totalorder %s172_s11, %s357_s1 }
  0x18   :  { %p178_p10 = pnand %p176_p9, %p173_p8 }
  0x1a   :  { %181 = shalt.err (!%p178_p10)
}
  0x1b   :  { %s182_s16 = scalar_lea.vmem %s33_s8, 256  ;;  %p187_p12 = scmp.lt.s32.totalorder %s33_s8, %s33_s8 }
  0x1c   :  { %p183_p11 = scmp.ne.s32.totalorder %s33_s8, %s182_s16  ;;  %p188_p13 = scmp.lt.s32.totalorder %s182_s16, %s182_s16 }
  0x1e   :  { %p189_p0 = por %p188_p13, %p187_p12 }
  0x20   :  { %p190_p1 = pnand %p189_p0, %p183_p11 }
  0x22   :  { %193 = shalt.err (!%p190_p1)
}
  0x23   :  { %38 = dma.hbm_to_vmem [thread:$0]  %s357_s1, 256, %s33_s8, [#allocation6], %s247_s28, %s247_s28, %s248_s29  }
  0x24   :  { %238 = dma.done.wait [#allocation3], 256  }
  0x25   :  { %239 = vsyncadd [#allocation3], 4294967040 }
  0x26   :  { %240 = dma.done.wait [#allocation6], 256  }
  0x27   :  { %241 = vsyncadd [#allocation6], 4294967040  ;;  %v49_v0 = vld [vmem:[#allocation2] sm:$0xff]  ;;  %v51_v1 = vld [vmem:[#allocation5] sm:$0xff]  ;;  %vm55_vm0 = vcmask 261120   ;;  %s250_s1 = smov [#allocation8]  }
  0x28   :  { %v50_v2 = vld [vmem:[#allocation2 + $0x8] sm:$0xff]  ;;  %v53_v3 = vadd.f32 %v51_v1, %v49_v0  ;;  %v52_v4 = vld [vmem:[#allocation5 + $0x8] sm:$0xff]  ;;  %s121_s18 = sshll.u32 %s250_s1, 4  ;;  %s122_s18 = int_to_ptr.vmem [resolvable:$true] %s121_s18 }
  0x29   :  { %v54_v5 = vadd.f32 %v52_v4, %v50_v2  ;;  %s194_s19 = scalar_lea.vmem %s122_s18, 256  ;;  %p199_p3 = scmp.lt.s32.totalorder %s122_s18, %s122_s18 }
  0x2a   :  { %v56_v6 = vsel %vm55_vm0, %v53_v3, 0.0  ;;  %102 = vst.msk [vmem:[#allocation8] sm:$0xff] %vm55_vm0, %v53_v3  ;;  %p195_p2 = scmp.ne.s32.totalorder %s122_s18, %s194_s19  ;;  %p200_p4 = scmp.lt.s32.totalorder %s194_s19, %s194_s19 }
  0x2b   :  { %57 = vadd.xlane.f32.xlu0 %v56_v6  ;;  %103 = vst.msk [vmem:[#allocation8 + $0x8] sm:$0xff] %vm55_vm0, %v54_v5  ;;  %v59_v7 = vsel %vm55_vm0, %v54_v5, 0.0 }
  0x2c   :  { %p201_p5 = por %p200_p4, %p199_p3 }
  0x2e   :  { %p202_p6 = pnand %p201_p5, %p195_p2 }
  0x2f   :  { %60 = vadd.xlane.f32.xlu0 %v59_v7 }
  0xb8   :  { %v58_v8 = vpop.xlane.xlu0 %57 }
  0xb9   :  { %v62_v9 = vmul.f32 0.03125, %v58_v8 }
  0xbb   :  { %v64_v10 = vsub.f32 %v53_v3, %v62_v9 }
  0xbc   :  { %v61_v11 = vpop.xlane.xlu0 %60 }
  0xbd   :  { %v63_v12 = vmul.f32 0.03125, %v61_v11  ;;  %v66_v13 = vmul.f32 %v64_v10, %v64_v10 }
  0xbf   :  { %v65_v14 = vsub.f32 %v54_v5, %v63_v12  ;;  %v68_v15 = vsel %vm55_vm0, %v66_v13, 0.0 }
  0xc0   :  { %69 = vadd.xlane.f32.xlu1 %v68_v15 }
  0xc1   :  { %v67_v16 = vmul.f32 %v65_v14, %v65_v14 }
  0xc3   :  { %v71_v17 = vsel %vm55_vm0, %v67_v16, 0.0 }
  0xc4   :  { %72 = vadd.xlane.f32.xlu1 %v71_v17 }
  0xc5   :  { %205 = shalt.err (!%p202_p6)
}
  0xc6   :  { %s206_s22 = scalar_lea.hbm %s361_s5, 256 }
  0xc7   :  { %p207_p7 = scmp.ne.s32.totalorder %s361_s5, %s206_s22  ;;  %p210_p8 = scmp.lt.u32.totalorder %s206_s22, %s361_s5 }
  0xc9   :  { %p212_p9 = pnand %p210_p8, %p207_p7 }
  0xcb   :  { %215 = shalt.err (!%p212_p9)
}
  0xcc   :  { %127 = dma.vmem_to_hbm [thread:$0]  %s122_s18, 256, %s361_s5, [#allocation9], %s247_s28, %s247_s28, %s248_s29  }
  0xcd   :  { %v138_v25 = vld [vmem:[%s358_s2] ss:$0 sm:$0xff]  ;;  %s251_s5 = smov [#allocation7]  }
  0xce   :  { %v139_v27 = vld [vmem:[%s359_s3] ss:$0 sm:$0xff]  ;;  %s109_s10 = sshll.u32 %s251_s5, 4  ;;  %s110_s10 = int_to_ptr.vmem [resolvable:$true] %s109_s10 }
  0xcf   :  { %s216_s11 = scalar_lea.vmem %s110_s10, 256  ;;  %p221_p11 = scmp.lt.s32.totalorder %s110_s10, %s110_s10 }
  0xd0   :  { %p217_p10 = scmp.ne.s32.totalorder %s110_s10, %s216_s11  ;;  %p222_p12 = scmp.lt.s32.totalorder %s216_s11, %s216_s11 }
  0xd2   :  { %p223_p13 = por %p222_p12, %p221_p11 }
  0xd4   :  { %p224_p0 = pnand %p223_p13, %p217_p10 }
 0x14d   :  { %v70_v18 = vpop.xlane.xlu1 %69 }
 0x14e   :  { %v74_v19 = vmul.f32 0.03125, %v70_v18 }
 0x150   :  { %v76_v20 = vadd.f32 1e-05, %v74_v19 }
 0x151   :  { %v73_v21 = vpop.xlane.xlu1 %72 }
 0x152   :  { %146 = vrsqrt.f32 %v76_v20  ;;  %v75_v22 = vmul.f32 0.03125, %v73_v21 }
 0x154   :  { %v77_v23 = vadd.f32 1e-05, %v75_v22 }
 0x156   :  { %148 = vrsqrt.f32 %v77_v23 }
 0x15c   :  { %v147_v24 = vpop.eup %146 }
 0x15d   :  { %v80_v26 = vmul.f32 %v147_v24, %v64_v10 }
 0x15f   :  { %v89_v28 = vmul.f32 %v138_v25, %v80_v26 }
 0x160   :  { %v149_v29 = vpop.eup %148 }
 0x161   :  { %v81_v30 = vmul.f32 %v149_v29, %v65_v14  ;;  %v98_v31 = vadd.f32 %v139_v27, %v89_v28 }
 0x163   :  { %v90_v32 = vmul.f32 %v138_v25, %v81_v30  ;;  %100 = vst.msk [vmem:[#allocation7] sm:$0xff] %vm55_vm0, %v98_v31 }
 0x165   :  { %v99_v33 = vadd.f32 %v139_v27, %v90_v32 }
 0x167   :  { %101 = vst.msk [vmem:[#allocation7 + $0x8] sm:$0xff] %vm55_vm0, %v99_v33 }
 0x168   :  { %227 = shalt.err (!%p224_p0)
}
 0x169   :  { %s228_s12 = scalar_lea.hbm %s360_s4, 256 }
 0x16a   :  { %p229_p1 = scmp.ne.s32.totalorder %s360_s4, %s228_s12  ;;  %p232_p2 = scmp.lt.u32.totalorder %s228_s12, %s360_s4 }
 0x16c   :  { %p234_p3 = pnand %p232_p2, %p229_p1 }
 0x16e   :  { %237 = shalt.err (!%p234_p3)
}
 0x16f   :  { %115 = dma.vmem_to_hbm [thread:$0]  %s110_s10, 256, %s360_s4, [#allocation4], %s247_s28, %s247_s28, %s248_s29  }
 0x170   :  { %242 = dma.done.wait [#allocation4], 256  }
 0x171   :  { %243 = vsyncadd [#allocation4], 4294967040 }
 0x172   :  { %244 = dma.done.wait [#allocation9], 256  }
 0x173   :  { %245 = vsyncadd [#allocation9], 4294967040 }
 0x174   :  { %134 = vsyncpa [#allocation3], 1 }
 0x175   :  { %135 = vsyncpa [#allocation6], 1 }
 0x176   :  { %136 = vsyncpa [#allocation4], 1 }
 0x177   :  { %137 = vsyncpa [#allocation9], 1 }

</bundles_post_ra>
